<compile_context>
chip_gen: v6e
topology: v6e:2x2x1
jax: 0.10.0
libtpu: 0.0.40
codegen_flags: <defaults>
</compile_context>

<pallas_src>
import jax
import jax.numpy as jnp
from jax.experimental import pallas as pl
from jax.experimental.pallas import tpu as pltpu


def _round_up(x, m):
    return ((x + m - 1) // m) * m


# ---------------------------------------------------------------------------
# Kernel 1: embedding gather + single-step LSTM cell (fused gate matmul).
# ---------------------------------------------------------------------------
def _lstm_cell_kernel(ids_ref,      # SMEM (B,)   int32
                      emb_ref,      # VMEM (V, E) f32   (whole table, resident)
                      h_ref,        # VMEM (B, H) f32
                      c_ref,        # VMEM (B, H) f32
                      w_cat_ref,    # VMEM (E+H, 4H) bf16
                      b_cat_ref,    # VMEM (1, 4H)   f32
                      h_out_ref,    # VMEM (B, H) f32
                      c_out_ref,    # VMEM (B, H) f32
                      h_bf16_ref,   # VMEM (B, H) bf16  (feeds the fc kernel)
                      x_vmem):      # scratch VMEM (B, E) f32
    B, E = x_vmem.shape
    H = h_ref.shape[-1]
    V = emb_ref.shape[0]

    # Gather the B embedding rows from the VMEM-resident table.
    # NOTE: out-of-range ids are clamped (PyTorch's nn.Embedding would raise);
    # this is intentional so a bad id can never turn into an OOB access.
    for b in range(B):
        row = jnp.clip(ids_ref[b], 0, V - 1)
        x_vmem[pl.ds(b, 1), :] = emb_ref[pl.ds(row, 1), :]

    x = x_vmem[...].astype(jnp.bfloat16)              # (B, E)   bf16
    h = h_ref[...]                                    # (B, H)   f32
    c = c_ref[...]                                    # (B, H)   f32

    xh = jnp.concatenate([x, h.astype(jnp.bfloat16)], axis=1)   # (B, E+H) bf16

    # One fused gate matmul: (B, E+H) x (E+H, 4H) -> (B, 4H), f32 accumulate.
    z = (jnp.dot(xh, w_cat_ref[...], preferred_element_type=jnp.float32)
         + b_cat_ref[...])

    # PyTorch gate order along the 4H axis: (i, f, g, o).
    i_g = jax.nn.sigmoid(z[:, 0 * H:1 * H])
    f_g = jax.nn.sigmoid(z[:, 1 * H:2 * H])
    g_g = jnp.tanh(z[:, 2 * H:3 * H])
    o_g = jax.nn.sigmoid(z[:, 3 * H:4 * H])

    c_new = f_g * c + i_g * g_g
    h_new = o_g * jnp.tanh(c_new)

    h_out_ref[...] = h_new
    c_out_ref[...] = c_new
    h_bf16_ref[...] = h_new.astype(jnp.bfloat16)


# ---------------------------------------------------------------------------
# Kernel 2: fc projection over one wide vocab tile (grid axis is parallel).
# ---------------------------------------------------------------------------
def _fc_kernel(h_ref, w_fc_ref, b_fc_ref, pred_ref):
    pred_ref[...] = (jnp.dot(h_ref[...], w_fc_ref[...],
                             preferred_element_type=jnp.float32)
                     + b_fc_ref[...])


def decoder_forward(x, hidden, cell, params, *, tn=2048):
    """x: [B] int token ids; hidden/cell: [1, B, H] f32.
    Returns (prediction [B, V] f32, hidden [1, B, H], cell [1, B, H])."""
    emb = params["embedding"]          # (V, E)    bf16
    w_cat = params["w_cat"]            # (E+H, 4H) bf16
    b_cat = params["b_cat"]            # (1, 4H)   f32
    w_fc_t = params["w_fc_t"]          # (H, V)    bf16
    b_fc = params["b_fc"]              # (1, V)    f32

    B = x.shape[0]
    V, E = emb.shape
    H = hidden.shape[-1]

    ids = x.astype(jnp.int32)
    h0 = hidden[0].astype(jnp.float32)
    c0 = cell[0].astype(jnp.float32)
    emb_f32 = emb.astype(jnp.float32)  # 32-bit rows -> simple dynamic slicing

    # ---- 1) embedding gather + LSTM cell (single invocation, no grid). ----
    lstm_cost = pl.CostEstimate(
        flops=2 * B * (E + H) * 4 * H,
        transcendentals=5 * B * H,
        bytes_accessed=(V * E * 4 + (E + H) * 4 * H * 2 + 4 * H * 4
                        + 5 * B * H * 4),
    )
    h_new, c_new, h_bf16 = pl.pallas_call(
        _lstm_cell_kernel,
        out_shape=(
            jax.ShapeDtypeStruct((B, H), jnp.float32),
            jax.ShapeDtypeStruct((B, H), jnp.float32),
            jax.ShapeDtypeStruct((B, H), jnp.bfloat16),
        ),
        in_specs=[
            pl.BlockSpec(memory_space=pltpu.MemorySpace.SMEM),   # token ids
            pl.BlockSpec(memory_space=pltpu.MemorySpace.VMEM),   # embedding
            pl.BlockSpec(memory_space=pltpu.MemorySpace.VMEM),   # h
            pl.BlockSpec(memory_space=pltpu.MemorySpace.VMEM),   # c
            pl.BlockSpec(memory_space=pltpu.MemorySpace.VMEM),   # w_cat
            pl.BlockSpec(memory_space=pltpu.MemorySpace.VMEM),   # b_cat
        ],
        out_specs=(
            pl.BlockSpec(memory_space=pltpu.MemorySpace.VMEM),
            pl.BlockSpec(memory_space=pltpu.MemorySpace.VMEM),
            pl.BlockSpec(memory_space=pltpu.MemorySpace.VMEM),
        ),
        scratch_shapes=[pltpu.VMEM((B, E), jnp.float32)],
        cost_estimate=lstm_cost,
    )(ids, emb_f32, h0, c0, w_cat, b_cat)

    # ---- 2) fc projection, vocab-tiled with wide lane-dense tiles. ----
    tn = max(256, min(tn, _round_up(V, 256)))   # whole vocab in one tile if small
    tn = _round_up(tn, 256)                     # lane-dense, MXU-N friendly
    num_tiles = pl.cdiv(V, tn)
    Vp = num_tiles * tn
    if Vp != V:                                 # padded logit columns sliced off
        w_fc_t = jnp.pad(w_fc_t, ((0, 0), (0, Vp - V)))
        b_fc = jnp.pad(b_fc, ((0, 0), (0, Vp - V)))

    # Double-buffered per-tile footprint (w_fc + b_fc + pred) + resident h.
    # Keep the limit well under v7x's 64 MiB VMEM.
    fc_tile_bytes = 2 * (H * tn * 2 + tn * 4 + B * tn * 4) + B * H * 2
    vmem_limit = int(min(max(2 * fc_tile_bytes, 16 * 1024 * 1024),
                         48 * 1024 * 1024))

    fc_cost = pl.CostEstimate(
        flops=2 * B * H * Vp,
        transcendentals=0,
        bytes_accessed=H * Vp * 2 + Vp * 4 + B * Vp * 4 + B * H * 2,
    )
    pred_p = pl.pallas_call(
        _fc_kernel,
        out_shape=jax.ShapeDtypeStruct((B, Vp), jnp.float32),
        grid=(num_tiles,),
        in_specs=[
            pl.BlockSpec((B, H), lambda j: (0, 0)),     # h (resident, bf16)
            pl.BlockSpec((H, tn), lambda j: (0, j)),    # w_fc tile
            pl.BlockSpec((1, tn), lambda j: (0, j)),    # b_fc tile
        ],
        out_specs=pl.BlockSpec((B, tn), lambda j: (0, j)),
        compiler_params=pltpu.CompilerParams(
            dimension_semantics=("parallel",),          # v7x: tiles across both TCs
            vmem_limit_bytes=vmem_limit,
        ),
        cost_estimate=fc_cost,
    )(h_bf16, w_fc_t, b_fc)

    return pred_p[:, :V], h_new[None, ...], c_new[None, ...]


def init_params(key, vocab_size, embed_size, hidden_size):
    """Build PyTorch-shaped params, then repack for the kernels:
    fused-gate weight (E+H, 4H), bf16 weights, fused bias."""
    ks = jax.random.split(key, 7)
    H = hidden_size
    emb = jax.random.normal(ks[0], (vocab_size, embed_size), jnp.float32) * 0.1
    w_ih = jax.random.normal(ks[1], (4 * H, embed_size), jnp.float32) * 0.1   # torch (4H, E)
    w_hh = jax.random.normal(ks[2], (4 * H, H), jnp.float32) * 0.1            # torch (4H, H)
    b_ih = jax.random.normal(ks[3], (4 * H,), jnp.float32) * 0.1
    b_hh = jax.random.normal(ks[4], (4 * H,), jnp.float32) * 0.1
    w_fc = jax.random.normal(ks[5], (vocab_size, H), jnp.float32) * 0.1       # torch (V, H)
    b_fc = jax.random.normal(ks[6], (vocab_size,), jnp.float32) * 0.1

    # Fused gate weight: [x, h] @ w_cat == x @ W_ih^T + h @ W_hh^T.
    # Gate order along the 4H axis stays PyTorch's (i, f, g, o).
    w_cat = jnp.concatenate([w_ih, w_hh], axis=1).T          # (E+H, 4H)
    b_cat = (b_ih + b_hh).reshape(1, 4 * H)                  # (1, 4H)

    return {
        "embedding": emb.astype(jnp.bfloat16),       # (V, E)
        "w_cat": w_cat.astype(jnp.bfloat16),         # (E+H, 4H)
        "b_cat": b_cat,                              # (1, 4H) f32
        "w_fc_t": w_fc.T.astype(jnp.bfloat16),       # (H, V)
        "b_fc": b_fc.reshape(1, -1),                 # (1, V) f32
    }


def _reference_forward(x, hidden, cell, params):
    """Pure-JAX reference mirroring the kernel numerics (bf16 weights,
    bf16 activations into the matmuls, f32 accumulation)."""
    H = hidden.shape[-1]
    emb_rows = params["embedding"][x]                                  # (B, E) bf16
    h, c = hidden[0], cell[0]
    xh = jnp.concatenate([emb_rows, h.astype(jnp.bfloat16)],
                         axis=1).astype(jnp.float32)                   # (B, E+H)
    z = xh @ params["w_cat"].astype(jnp.float32) + params["b_cat"]     # (B, 4H)
    i = jax.nn.sigmoid(z[:, 0 * H:1 * H])
    f = jax.nn.sigmoid(z[:, 1 * H:2 * H])
    g = jnp.tanh(z[:, 2 * H:3 * H])
    o = jax.nn.sigmoid(z[:, 3 * H:4 * H])
    c_new = f * c + i * g
    h_new = o * jnp.tanh(c_new)
    pred = (h_new.astype(jnp.bfloat16).astype(jnp.float32)
            @ params["w_fc_t"].astype(jnp.float32) + params["b_fc"])
    return pred, h_new[None], c_new[None]


if __name__ == "__main__":
    vocab_size, embed_size, hidden_size, batch = 512, 32, 32, 8

    key = jax.random.PRNGKey(0)
    k_tok, k_h, k_c, k_par = jax.random.split(key, 4)

    x = jax.random.randint(k_tok, (batch,), 0, vocab_size, dtype=jnp.int32)
    hidden = jax.random.normal(k_h, (1, batch, hidden_size), jnp.float32)
    cell = jax.random.normal(k_c, (1, batch, hidden_size), jnp.float32)
    params = init_params(k_par, vocab_size, embed_size, hidden_size)

    pred, h_new, c_new = jax.block_until_ready(
        decoder_forward(x, hidden, cell, params))

    # Sanity check against the pure-JAX reference.
    pred_r, h_r, c_r = _reference_forward(x, hidden, cell, params)
    assert pred.shape == (batch, vocab_size)
    assert h_new.shape == (1, batch, hidden_size)
    assert c_new.shape == (1, batch, hidden_size)
    assert jnp.allclose(h_new, h_r, atol=2e-3), float(jnp.abs(h_new - h_r).max())
    assert jnp.allclose(c_new, c_r, atol=2e-3), float(jnp.abs(c_new - c_r).max())
    assert jnp.allclose(pred, pred_r, atol=2e-3), float(jnp.abs(pred - pred_r).max())

    print("KERNEL_OK")
</pallas_src>

<mosaic_0001>
module attributes {stable_mosaic.version = 11 : i64} {
  func.func @_lstm_cell_kernel(%arg0: memref<8xi32, #tpu.memory_space<smem>>, %arg1: memref<512x32xf32, #tpu.memory_space<vmem>>, %arg2: memref<8x32xf32, #tpu.memory_space<vmem>>, %arg3: memref<8x32xf32, #tpu.memory_space<vmem>>, %arg4: memref<64x128xbf16, #tpu.memory_space<vmem>>, %arg5: memref<1x128xf32, #tpu.memory_space<vmem>>, %arg6: memref<8x32xf32, #tpu.memory_space<vmem>>, %arg7: memref<8x32xf32, #tpu.memory_space<vmem>>, %arg8: memref<8x32xbf16, #tpu.memory_space<vmem>>, %arg9: memref<8x32xf32, #tpu.memory_space<vmem>>) attributes {dimension_semantics = [], scalar_prefetch = 0 : i64, scratch_operands = 1 : i64, tpu.core_type = #tpu.core_type<tc>} {
    %c0 = arith.constant 0 : index
    %0 = memref.load %arg0[%c0] : memref<8xi32, #tpu.memory_space<smem>>
    %c0_i32 = arith.constant 0 : i32
    %c511_i32 = arith.constant 511 : i32
    %1 = arith.maxsi %c0_i32, %0 : i32
    %2 = arith.minsi %c511_i32, %1 : i32
    %3 = arith.index_cast %2 : i32 to index
    %c0_0 = arith.constant 0 : index
    %4 = vector.load %arg1[%3, %c0_0] : memref<512x32xf32, #tpu.memory_space<vmem>>, vector<1x32xf32>
    %c0_1 = arith.constant 0 : index
    %c0_2 = arith.constant 0 : index
    %5 = vector.load %arg9[%c0_1, %c0_2] : memref<8x32xf32, #tpu.memory_space<vmem>>, vector<1x32xf32>
    tpu.vector_store %arg9[%c0_1, %c0_2], %4 {strides = array<i32>} : memref<8x32xf32, #tpu.memory_space<vmem>>, vector<1x32xf32>,
    %c1 = arith.constant 1 : index
    %6 = memref.load %arg0[%c1] : memref<8xi32, #tpu.memory_space<smem>>
    %c0_i32_3 = arith.constant 0 : i32
    %c511_i32_4 = arith.constant 511 : i32
    %7 = arith.maxsi %c0_i32_3, %6 : i32
    %8 = arith.minsi %c511_i32_4, %7 : i32
    %9 = arith.index_cast %8 : i32 to index
    %c0_5 = arith.constant 0 : index
    %10 = vector.load %arg1[%9, %c0_5] : memref<512x32xf32, #tpu.memory_space<vmem>>, vector<1x32xf32>
    %c1_6 = arith.constant 1 : index
    %c0_7 = arith.constant 0 : index
    %11 = vector.load %arg9[%c1_6, %c0_7] : memref<8x32xf32, #tpu.memory_space<vmem>>, vector<1x32xf32>
    tpu.vector_store %arg9[%c1_6, %c0_7], %10 {strides = array<i32>} : memref<8x32xf32, #tpu.memory_space<vmem>>, vector<1x32xf32>,
    %c2 = arith.constant 2 : index
    %12 = memref.load %arg0[%c2] : memref<8xi32, #tpu.memory_space<smem>>
    %c0_i32_8 = arith.constant 0 : i32
    %c511_i32_9 = arith.constant 511 : i32
    %13 = arith.maxsi %c0_i32_8, %12 : i32
    %14 = arith.minsi %c511_i32_9, %13 : i32
    %15 = arith.index_cast %14 : i32 to index
    %c0_10 = arith.constant 0 : index
    %16 = vector.load %arg1[%15, %c0_10] : memref<512x32xf32, #tpu.memory_space<vmem>>, vector<1x32xf32>
    %c2_11 = arith.constant 2 : index
    %c0_12 = arith.constant 0 : index
    %17 = vector.load %arg9[%c2_11, %c0_12] : memref<8x32xf32, #tpu.memory_space<vmem>>, vector<1x32xf32>
    tpu.vector_store %arg9[%c2_11, %c0_12], %16 {strides = array<i32>} : memref<8x32xf32, #tpu.memory_space<vmem>>, vector<1x32xf32>,
    %c3 = arith.constant 3 : index
    %18 = memref.load %arg0[%c3] : memref<8xi32, #tpu.memory_space<smem>>
    %c0_i32_13 = arith.constant 0 : i32
    %c511_i32_14 = arith.constant 511 : i32
    %19 = arith.maxsi %c0_i32_13, %18 : i32
    %20 = arith.minsi %c511_i32_14, %19 : i32
    %21 = arith.index_cast %20 : i32 to index
    %c0_15 = arith.constant 0 : index
    %22 = vector.load %arg1[%21, %c0_15] : memref<512x32xf32, #tpu.memory_space<vmem>>, vector<1x32xf32>
    %c3_16 = arith.constant 3 : index
    %c0_17 = arith.constant 0 : index
    %23 = vector.load %arg9[%c3_16, %c0_17] : memref<8x32xf32, #tpu.memory_space<vmem>>, vector<1x32xf32>
    tpu.vector_store %arg9[%c3_16, %c0_17], %22 {strides = array<i32>} : memref<8x32xf32, #tpu.memory_space<vmem>>, vector<1x32xf32>,
    %c4 = arith.constant 4 : index
    %24 = memref.load %arg0[%c4] : memref<8xi32, #tpu.memory_space<smem>>
    %c0_i32_18 = arith.constant 0 : i32
    %c511_i32_19 = arith.constant 511 : i32
    %25 = arith.maxsi %c0_i32_18, %24 : i32
    %26 = arith.minsi %c511_i32_19, %25 : i32
    %27 = arith.index_cast %26 : i32 to index
    %c0_20 = arith.constant 0 : index
    %28 = vector.load %arg1[%27, %c0_20] : memref<512x32xf32, #tpu.memory_space<vmem>>, vector<1x32xf32>
    %c4_21 = arith.constant 4 : index
    %c0_22 = arith.constant 0 : index
    %29 = vector.load %arg9[%c4_21, %c0_22] : memref<8x32xf32, #tpu.memory_space<vmem>>, vector<1x32xf32>
    tpu.vector_store %arg9[%c4_21, %c0_22], %28 {strides = array<i32>} : memref<8x32xf32, #tpu.memory_space<vmem>>, vector<1x32xf32>,
    %c5 = arith.constant 5 : index
    %30 = memref.load %arg0[%c5] : memref<8xi32, #tpu.memory_space<smem>>
    %c0_i32_23 = arith.constant 0 : i32
    %c511_i32_24 = arith.constant 511 : i32
    %31 = arith.maxsi %c0_i32_23, %30 : i32
    %32 = arith.minsi %c511_i32_24, %31 : i32
    %33 = arith.index_cast %32 : i32 to index
    %c0_25 = arith.constant 0 : index
    %34 = vector.load %arg1[%33, %c0_25] : memref<512x32xf32, #tpu.memory_space<vmem>>, vector<1x32xf32>
    %c5_26 = arith.constant 5 : index
    %c0_27 = arith.constant 0 : index
    %35 = vector.load %arg9[%c5_26, %c0_27] : memref<8x32xf32, #tpu.memory_space<vmem>>, vector<1x32xf32>
    tpu.vector_store %arg9[%c5_26, %c0_27], %34 {strides = array<i32>} : memref<8x32xf32, #tpu.memory_space<vmem>>, vector<1x32xf32>,
    %c6 = arith.constant 6 : index
    %36 = memref.load %arg0[%c6] : memref<8xi32, #tpu.memory_space<smem>>
    %c0_i32_28 = arith.constant 0 : i32
    %c511_i32_29 = arith.constant 511 : i32
    %37 = arith.maxsi %c0_i32_28, %36 : i32
    %38 = arith.minsi %c511_i32_29, %37 : i32
    %39 = arith.index_cast %38 : i32 to index
    %c0_30 = arith.constant 0 : index
    %40 = vector.load %arg1[%39, %c0_30] : memref<512x32xf32, #tpu.memory_space<vmem>>, vector<1x32xf32>
    %c6_31 = arith.constant 6 : index
    %c0_32 = arith.constant 0 : index
    %41 = vector.load %arg9[%c6_31, %c0_32] : memref<8x32xf32, #tpu.memory_space<vmem>>, vector<1x32xf32>
    tpu.vector_store %arg9[%c6_31, %c0_32], %40 {strides = array<i32>} : memref<8x32xf32, #tpu.memory_space<vmem>>, vector<1x32xf32>,
    %c7 = arith.constant 7 : index
    %42 = memref.load %arg0[%c7] : memref<8xi32, #tpu.memory_space<smem>>
    %c0_i32_33 = arith.constant 0 : i32
    %c511_i32_34 = arith.constant 511 : i32
    %43 = arith.maxsi %c0_i32_33, %42 : i32
    %44 = arith.minsi %c511_i32_34, %43 : i32
    %45 = arith.index_cast %44 : i32 to index
    %c0_35 = arith.constant 0 : index
    %46 = vector.load %arg1[%45, %c0_35] : memref<512x32xf32, #tpu.memory_space<vmem>>, vector<1x32xf32>
    %c7_36 = arith.constant 7 : index
    %c0_37 = arith.constant 0 : index
    %47 = vector.load %arg9[%c7_36, %c0_37] : memref<8x32xf32, #tpu.memory_space<vmem>>, vector<1x32xf32>
    tpu.vector_store %arg9[%c7_36, %c0_37], %46 {strides = array<i32>} : memref<8x32xf32, #tpu.memory_space<vmem>>, vector<1x32xf32>,
    %c0_38 = arith.constant 0 : index
    %c0_39 = arith.constant 0 : index
    %48 = vector.load %arg9[%c0_38, %c0_39] : memref<8x32xf32, #tpu.memory_space<vmem>>, vector<8x32xf32>
    %49 = arith.truncf %48 : vector<8x32xf32> to vector<8x32xbf16>
    %c0_40 = arith.constant 0 : index
    %c0_41 = arith.constant 0 : index
    %50 = vector.load %arg2[%c0_40, %c0_41] : memref<8x32xf32, #tpu.memory_space<vmem>>, vector<8x32xf32>
    %c0_42 = arith.constant 0 : index
    %c0_43 = arith.constant 0 : index
    %51 = vector.load %arg3[%c0_42, %c0_43] : memref<8x32xf32, #tpu.memory_space<vmem>>, vector<8x32xf32>
    %52 = arith.truncf %50 : vector<8x32xf32> to vector<8x32xbf16>
    %53 = tpu.concatenate %49, %52 in 1 : vector<8x32xbf16>, vector<8x32xbf16> -> vector<8x64xbf16>
    %c0_44 = arith.constant 0 : index
    %c0_45 = arith.constant 0 : index
    %54 = vector.load %arg4[%c0_44, %c0_45] : memref<64x128xbf16, #tpu.memory_space<vmem>>, vector<64x128xbf16>
    %cst = arith.constant dense<0.000000e+00> : vector<8x128xf32>
    %55 = tpu.matmul %53, %54, %cst {dimension_numbers = #tpu.dot_dimension_numbers<[1], [0], [0], [1], [0, 0, 1, 1], [], []>} : vector<8x64xbf16>, vector<64x128xbf16>, vector<8x128xf32> -> vector<8x128xf32>
    %c0_46 = arith.constant 0 : index
    %c0_47 = arith.constant 0 : index
    %56 = vector.load %arg5[%c0_46, %c0_47] : memref<1x128xf32, #tpu.memory_space<vmem>>, vector<1x128xf32>
    %57 = vector.broadcast %56 : vector<1x128xf32> to vector<8x128xf32>
    %58 = arith.addf %55, %57 : vector<8x128xf32>
    %59 = vector.extract_strided_slice %58 {offsets = [0, 0], sizes = [8, 32], strides = [1, 1]} : vector<8x128xf32> to vector<8x32xf32>
    %60 = arith.negf %59 : vector<8x32xf32>
    %61 = math.exp %60 : vector<8x32xf32>
    %cst_48 = arith.constant 1.000000e+00 : f32
    %62 = vector.broadcast %cst_48 : f32 to vector<8x32xf32>
    %63 = arith.addf %62, %61 : vector<8x32xf32>
    %64 = arith.divf %62, %63 : vector<8x32xf32>
    %65 = vector.extract_strided_slice %58 {offsets = [0, 32], sizes = [8, 32], strides = [1, 1]} : vector<8x128xf32> to vector<8x32xf32>
    %66 = arith.negf %65 : vector<8x32xf32>
    %67 = math.exp %66 : vector<8x32xf32>
    %cst_49 = arith.constant 1.000000e+00 : f32
    %68 = vector.broadcast %cst_49 : f32 to vector<8x32xf32>
    %69 = arith.addf %68, %67 : vector<8x32xf32>
    %70 = arith.divf %68, %69 : vector<8x32xf32>
    %71 = vector.extract_strided_slice %58 {offsets = [0, 64], sizes = [8, 32], strides = [1, 1]} : vector<8x128xf32> to vector<8x32xf32>
    %72 = math.tanh %71 : vector<8x32xf32>
    %73 = vector.extract_strided_slice %58 {offsets = [0, 96], sizes = [8, 32], strides = [1, 1]} : vector<8x128xf32> to vector<8x32xf32>
    %74 = arith.negf %73 : vector<8x32xf32>
    %75 = math.exp %74 : vector<8x32xf32>
    %cst_50 = arith.constant 1.000000e+00 : f32
    %76 = vector.broadcast %cst_50 : f32 to vector<8x32xf32>
    %77 = arith.addf %76, %75 : vector<8x32xf32>
    %78 = arith.divf %76, %77 : vector<8x32xf32>
    %79 = arith.mulf %70, %51 : vector<8x32xf32>
    %80 = arith.mulf %64, %72 : vector<8x32xf32>
    %81 = arith.addf %79, %80 : vector<8x32xf32>
    %82 = math.tanh %81 : vector<8x32xf32>
    %83 = arith.mulf %78, %82 : vector<8x32xf32>
    %c0_51 = arith.constant 0 : index
    %c0_52 = arith.constant 0 : index
    %84 = vector.load %arg6[%c0_51, %c0_52] : memref<8x32xf32, #tpu.memory_space<vmem>>, vector<8x32xf32>
    tpu.vector_store %arg6[%c0_51, %c0_52], %83 {strides = array<i32>} : memref<8x32xf32, #tpu.memory_space<vmem>>, vector<8x32xf32>,
    %c0_53 = arith.constant 0 : index
    %c0_54 = arith.constant 0 : index
    %85 = vector.load %arg7[%c0_53, %c0_54] : memref<8x32xf32, #tpu.memory_space<vmem>>, vector<8x32xf32>
    tpu.vector_store %arg7[%c0_53, %c0_54], %81 {strides = array<i32>} : memref<8x32xf32, #tpu.memory_space<vmem>>, vector<8x32xf32>,
    %86 = arith.truncf %83 : vector<8x32xf32> to vector<8x32xbf16>
    %c0_55 = arith.constant 0 : index
    %c0_56 = arith.constant 0 : index
    %87 = vector.load %arg8[%c0_55, %c0_56] : memref<8x32xbf16, #tpu.memory_space<vmem>>, vector<8x32xbf16>
    tpu.vector_store %arg8[%c0_55, %c0_56], %86 {strides = array<i32>} : memref<8x32xbf16, #tpu.memory_space<vmem>>, vector<8x32xbf16>,
    return
  }
}

</mosaic_0001>

<bundles_post_ra>
// kernel: tpu_custom_call.1
= control target key start
LH: loop header
LB: loop body
LE: loop exit
PB: predicated region body
PF: predicated region fallthrough
CT: control target
= control target key end

     0   :  { %14 = vsyncpa [#allocation5], 0  ;;  %s633_s0 = inlined_call_operand.vmem [shape: s32[8], index: 0, kind: input, shape index: {}]   ;;  %s634_s1 = inlined_call_operand.vmem [shape: f32[512,32], index: 1, kind: input, shape index: {}]   ;;  %s635_s2 = inlined_call_operand.vmem [shape: f32[8,32], index: 2, kind: input, shape index: {}]   ;;  %s636_s3 = inlined_call_operand.vmem [shape: f32[8,32], index: 3, kind: input, shape index: {}]   ;;  %s637_s4 = inlined_call_operand.vmem [shape: bf16[64,128], index: 4, kind: input, shape index: {}]   ;;  %s638_s5 = inlined_call_operand.vmem [shape: f32[1,128], index: 5, kind: input, shape index: {}]   ;;  %s639_s6 = inlined_call_operand.hbm [shape: f32[8,32], index: 6, kind: output, shape index: {0}]   ;;  %s640_s7 = inlined_call_operand.hbm [shape: f32[8,32], index: 7, kind: output, shape index: {1}]   ;;  %s641_s8 = inlined_call_operand.hbm [shape: bf16[8,32], index: 8, kind: output, shape index: {2}]  }
   0x1   :  { %15 = vsyncpa [#allocation4], 0 }
   0x2   :  { %16 = vsyncpa [#allocation8], 0  ;;  %s23_s29 = sshll.u32 %s633_s0, 4  ;;  %s24_s29 = int_to_ptr.vmem [resolvable:$true] %s23_s29 }
   0x3   :  { %s408_s30 = scalar_lea.vmem %s24_s29, 16  ;;  %p413_p1 = scmp.lt.s32.totalorder %s24_s29, %s24_s29 }
   0x4   :  { %p409_p0 = scmp.ne.s32.totalorder %s24_s29, %s408_s30  ;;  %p414_p2 = scmp.lt.s32.totalorder %s408_s30, %s408_s30 }
   0x6   :  { %p415_p3 = por %p414_p2, %p413_p1 }
   0x8   :  { %p416_p4 = pnand %p415_p3, %p409_p0 }
   0xa   :  { %419 = shalt.err (!%p416_p4)
}
   0xb   :  { %s486_s9 = smov [#allocation3]  }
   0xc   :  { %26 = dma.vmem_to_smem %s24_s29, 16, %s486_s9, [#allocation5]  }
   0xd   :  { %480 = dma.done.wait [#allocation5], 16  }
   0xe   :  { %481 = vsyncadd [#allocation5], 4294967280 }
   0xf   :  { %40 = sfence }
  0x10   :  { %v109_v0 = vld [vmem:[%s635_s2] sm:$0xff]  ;;  %v396_v1 = vld [vmem:[%s637_s4 + $0x18] sm:$0xff]   ;;  %v487_v3 = vmov 0.0   ;;  %v397_v4 = vld [vmem:[%s637_s4 + $0x10] sm:$0xff]   ;;  %s488_s15 = smov 32   ;;  %s42_s16 = sld [smem:[#allocation3]] }
  0x11   :  { %v111_v2 = vpack.c.bf16 %v109_v0, %v109_v0  ;;  %375 = vmatprep.subr.bf16.mxu0 %v487_v3  ;;  %v110_v5 = vld [vmem:[%s636_s3] sm:$0xff]  ;;  %s303_s2 = sld [smem:[#allocation3 + $0x1]]  ;;  %vm489_vm0 = vmmov 0   ;;  %v398_v6 = vld [vmem:[%s637_s4 + $0x8] sm:$0xff]   ;;  %vm49_vm1 = vcmask 253952   ;;  %vm115_vm2 = vcmask 261120  }
  0x12   :  { %376 = vmatpush3.bf16.msra.mxu0 %v396_v1  ;;  %383 = vmatprep.mubr.msk.bf16.mxu0 %vm489_vm0, %v487_v3  ;;  %s560_s21 = sld [smem:[#allocation3 + $0x2]]  ;;  %v399_v7 = vld [vmem:[%s637_s4] sm:$0xff]   ;;  %vm158_vm3 = vcmask 523264   ;;  %s492_s29 = smov [#allocation7]  }
  0x13   :  { %113 = vrot.lane.b32.xlu0 %v111_v2, %s488_s15  ;;  %377 = vmatprep.subr.bf16.mxu0 %v487_v3  ;;  %s562_s22 = sld [smem:[#allocation3 + $0x3]]  ;;  %v345_v20 = vld [vmem:[%s638_s5] ss:$0 sm:$0xff]  ;;  %s491_s5 = smov 96  }
  0x14   :  { %209 = vrot.lane.b32.xlu1 %v110_v5, %s488_s15  ;;  %s564_s23 = sld [smem:[#allocation3 + $0x4]] }
  0x15   :  { %s566_s24 = sld [smem:[#allocation3 + $0x5]] }
  0x16   :  { %378 = vmatpush3.bf16.msra.mxu0 %v397_v4  ;;  %p43_p5 = scmp.gt.s32.totalorder %s42_s16, 0  ;;  %p298_p6 = scmp.lt.s32.totalorder %s42_s16, 511 }
  0x17   :  { %379 = vmatprep.subr.bf16.mxu0 %v487_v3  ;;  %p52_p7 = scmp.gt.s32.totalorder %s303_s2, 0  ;;  %p304_p8 = scmp.lt.s32.totalorder %s303_s2, 511 }
  0x18   :  { %s643_s16 = smov (!%p43_p5, %s42_s16), 0  ;;  %p60_p9 = scmp.gt.s32.totalorder %s560_s21, 0 }
  0x19   :  { %s645_s2 = smov (!%p52_p7, %s303_s2), 0  ;;  %s647_s16 = smov (!%p298_p6, %s643_s16), 511 }
  0x1a   :  { %380 = vmatpush3.bf16.msra.mxu0 %v398_v6  ;;  %s649_s2 = smov (!%p304_p8, %s645_s2), 511  ;;  %s47_s4 = scalar_lea.vmem %s634_s1, %s647_s16 }
  0x1b   :  { %381 = vmatprep.subr.bf16.mxu0 %v487_v3  ;;  %v48_v8 = vld [vmem:[%s47_s4] sm:$0x1]  ;;  %s56_s30 = scalar_lea.vmem %s634_s1, %s649_s2  ;;  %p310_p10 = scmp.lt.s32.totalorder %s560_s21, 511 }
  0x1c   :  { %50 = vst.msk [vmem:[#allocation2] sm:$0x1] %vm49_vm1, %v48_v8  ;;  %v57_v9 = vld [vmem:[%s56_s30] sm:$0x1]  ;;  %s651_s21 = smov (!%p60_p9, %s560_s21), 0  ;;  %p68_p11 = scmp.gt.s32.totalorder %s562_s22, 0 }
  0x1d   :  { %58 = vst.msk [vmem:[#allocation2 + $0x1] sm:$0x1] %vm49_vm1, %v57_v9  ;;  %p316_p12 = scmp.lt.s32.totalorder %s562_s22, 511  ;;  %s653_s21 = smov (!%p310_p10, %s651_s21), 511 }
  0x1e   :  { %382 = vmatpush3.bf16.msra.mxu0 %v399_v7  ;;  %s655_s22 = smov (!%p68_p11, %s562_s22), 0  ;;  %s64_s11 = scalar_lea.vmem %s634_s1, %s653_s21 }
  0x1f   :  { %p76_p13 = scmp.gt.s32.totalorder %s564_s23, 0  ;;  %v65_v10 = vld [vmem:[%s64_s11] sm:$0x1]  ;;  %s657_s22 = smov (!%p316_p12, %s655_s22), 511 }
  0x20   :  { %66 = vst.msk [vmem:[#allocation2 + $0x2] sm:$0x1] %vm49_vm1, %v65_v10  ;;  %s72_s14 = scalar_lea.vmem %s634_s1, %s657_s22  ;;  %p322_p0 = scmp.lt.s32.totalorder %s564_s23, 511 }
  0x21   :  { %s77_s12 = scalar_select %p76_p13, %s564_s23, 0  ;;  %v73_v11 = vld [vmem:[%s72_s14] sm:$0x1] }
  0x22   :  { %p84_p1 = scmp.gt.s32.totalorder %s566_s24, 0  ;;  %p328_p2 = scmp.lt.s32.totalorder %s566_s24, 511  ;;  %74 = vst.msk [vmem:[#allocation2 + $0x3] sm:$0x1] %vm49_vm1, %v73_v11 }
  0x23   :  { %s659_s12 = smov (!%p322_p0, %s77_s12), 511  ;;  %s333_s2 = sld [smem:[#allocation3 + $0x6]] }
  0x24   :  { %s661_s24 = smov (!%p84_p1, %s566_s24), 0  ;;  %s80_s18 = scalar_lea.vmem %s634_s1, %s659_s12 }
  0x25   :  { %v81_v12 = vld [vmem:[%s80_s18] sm:$0x1]  ;;  %s663_s24 = smov (!%p328_p2, %s661_s24), 511  ;;  %s339_s19 = sld [smem:[#allocation3 + $0x7]] }
  0x26   :  { %82 = vst.msk [vmem:[#allocation2 + $0x4] sm:$0x1] %vm49_vm1, %v81_v12  ;;  %s88_s22 = scalar_lea.vmem %s634_s1, %s663_s24  ;;  %s264_s30 = sshll.u32 %s492_s29, 4  ;;  %s265_s30 = int_to_ptr.vmem [resolvable:$true] %s264_s30 }
  0x27   :  { %v89_v13 = vld [vmem:[%s88_s22] sm:$0x1]  ;;  %s420_s9 = scalar_lea.vmem %s265_s30, 128  ;;  %p425_p8 = scmp.lt.s32.totalorder %s265_s30, %s265_s30 }
  0x28   :  { %90 = vst.msk [vmem:[#allocation2 + $0x5] sm:$0x1] %vm49_vm1, %v89_v13  ;;  %p421_p7 = scmp.ne.s32.totalorder %s265_s30, %s420_s9  ;;  %p426_p9 = scmp.lt.s32.totalorder %s420_s9, %s420_s9 }
  0x29   :  { %p92_p3 = scmp.gt.s32.totalorder %s333_s2, 0  ;;  %p334_p4 = scmp.lt.s32.totalorder %s333_s2, 511 }
  0x2a   :  { %p427_p10 = por %p426_p9, %p425_p8 }
  0x2b   :  { %s665_s2 = smov (!%p92_p3, %s333_s2), 0  ;;  %p100_p5 = scmp.gt.s32.totalorder %s339_s19, 0 }
  0x2c   :  { %p340_p6 = scmp.lt.s32.totalorder %s339_s19, 511  ;;  %s667_s2 = smov (!%p334_p4, %s665_s2), 511 }
  0x2d   :  { %s669_s19 = smov (!%p100_p5, %s339_s19), 0  ;;  %s96_s25 = scalar_lea.vmem %s634_s1, %s667_s2 }
  0x2e   :  { %v97_v14 = vld [vmem:[%s96_s25] sm:$0x1]  ;;  %s671_s19 = smov (!%p340_p6, %s669_s19), 511  ;;  %p428_p11 = pnand %p427_p10, %p421_p7 }
  0x2f   :  { %98 = vst.msk [vmem:[#allocation2 + $0x6] sm:$0x1] %vm49_vm1, %v97_v14  ;;  %s104_s27 = scalar_lea.vmem %s634_s1, %s671_s19  ;;  %s490_s1 = smov 64  }
  0x30   :  { %v105_v15 = vld [vmem:[%s104_s27] sm:$0x1] }
  0x31   :  { %106 = vst.msk [vmem:[#allocation2 + $0x7] sm:$0x1] %vm49_vm1, %v105_v15 }
  0x38   :  { %v107_v16 = vld [vmem:[#allocation2] sm:$0xff] }
  0x39   :  { %v108_v17 = vpack.c.bf16 %v107_v16, %v107_v16 }
  0x85   :  { %v114_v18 = vpop.permute.xlu0 %113 }
  0x86   :  { %v118_v19 = vsel %vm115_vm2, %v108_v17, %v114_v18  ;;  %v210_v33 = vpop.permute.xlu1 %209 }
  0x87   :  { %384 = vmatmul.mubr.msk.bf16.vlgmr.msra.gmra.mxu0 %vm158_vm3, %v118_v19 }
 0x147   :  { %v195_v21 = vpop.f32.mrf.mxu0 }
 0x148   :  { %v196_v22 = vadd.f32 %v345_v20, %v195_v21 }
 0x149   :  { %v385_v23 = vpop.f32.mrf.mxu0 }
 0x14a   :  { %400 = vtanh.f32 %v196_v22  ;;  %v351_v27 = vmul.f32 -1.442695, %v196_v22 }
 0x14b   :  { %v198_v24 = vpop.f32.mrf.mxu0 }
 0x14c   :  { %402 = vpow2.f32 %v351_v27 }
 0x14d   :  { %v386_v25 = vpop.f32.mrf.mxu0 }
 0x157   :  { %v401_v26 = vpop.eup %400 }
 0x158   :  { %214 = vrot.lane.b32.xlu0 %v401_v26, %s490_s1 }
 0x159   :  { %v403_v28 = vpop.eup %402 }
 0x15a   :  { %v204_v29 = vadd.f32 1.0, %v403_v28 }
 0x15c   :  { %404 = vrcp.f32 %v204_v29 }
 0x169   :  { %v405_v30 = vpop.eup %404 }
 0x16a   :  { %v212_v34 = vmul.f32 %v405_v30, %v210_v33 }
 0x1ca   :  { %v215_v31 = vpop.permute.xlu0 %214 }
 0x1cb   :  { %v217_v32 = vmul.f32 %v405_v30, %v215_v31 }
 0x1cd   :  { %219 = vrot.lane.b32.xlu1 %v217_v32, %s488_s15 }
 0x23f   :  { %v220_v35 = vpop.permute.xlu1 %219 }
 0x240   :  { %v222_v36 = vadd.f32 %v220_v35, %v212_v34 }
 0x242   :  { %406 = vtanh.f32 %v222_v36  ;;  %235 = vrot.lane.b32.xlu1 %v222_v36, %s491_s5 }
 0x24f   :  { %v407_v37 = vpop.eup %406 }
 0x250   :  { %225 = vrot.lane.b32.xlu0 %v407_v37, %s490_s1 }
 0x2b4   :  { %v236_v38 = vpop.permute.xlu1 %235 }
 0x2b5   :  { %238 = vst.msk [vmem:[#allocation7] sm:$0xff] %vm115_vm2, %v236_v38 }
 0x2b6   :  { %431 = shalt.err (!%p428_p11)
}
 0x2b7   :  { %267 = dma.vmem_to_hbm [thread:$0]  %s265_s30, 128, %s640_s7, [#allocation8]   ;;  %vm246_vm4 = vcmask 257024  }
 0x2b8   :  { %s493_s12 = smov [#allocation6]   ;;  %s494_s0 = smov [#allocation9]  }
 0x2b9   :  { %s254_s13 = sshll.u32 %s493_s12, 4  ;;  %s274_s14 = sshll.u32 %s494_s0, 4  ;;  %s255_s13 = int_to_ptr.vmem [resolvable:$true] %s254_s13  ;;  %s275_s14 = int_to_ptr.vmem [resolvable:$true] %s274_s14 }
 0x2ba   :  { %s440_s16 = scalar_lea.vmem %s255_s13, 128  ;;  %p445_p13 = scmp.lt.s32.totalorder %s255_s13, %s255_s13 }
 0x2bb   :  { %p441_p12 = scmp.ne.s32.totalorder %s255_s13, %s440_s16  ;;  %p446_p0 = scmp.lt.s32.totalorder %s440_s16, %s440_s16 }
 0x2bd   :  { %p447_p1 = por %p446_p0, %p445_p13 }
 0x2bf   :  { %p448_p2 = pnand %p447_p1, %p441_p12 }
 0x2c2   :  { %v226_v39 = vpop.permute.xlu0 %225 }
 0x2c3   :  { %v228_v40 = vmul.f32 %v405_v30, %v226_v39 }
 0x2c5   :  { %v369_v41 = vpack.c.bf16 %v228_v40, %v228_v40  ;;  %230 = vrot.lane.b32.xlu0 %v228_v40, %s488_s15 }
 0x2c7   :  { %243 = vrot.lane.b32.xlu1 %v369_v41, %s488_s15 }
 0x337   :  { %v231_v42 = vpop.permute.xlu0 %230 }
 0x338   :  { %233 = vst.msk [vmem:[#allocation6] sm:$0xff] %vm115_vm2, %v231_v42 }
 0x339   :  { %v244_v43 = vpop.permute.xlu1 %243 }
 0x33a   :  { %451 = shalt.err (!%p448_p2)
}
 0x33b   :  { %257 = dma.vmem_to_hbm [thread:$0]  %s255_s13, 128, %s639_s6, [#allocation4]   ;;  %247 = vst.msk [vmem:[#allocation9] sm:$0xf] %vm246_vm4, %v244_v43 }
 0x33c   :  { %s460_s17 = scalar_lea.vmem %s275_s14, 64  ;;  %p465_p4 = scmp.lt.s32.totalorder %s275_s14, %s275_s14 }
 0x33d   :  { %p461_p3 = scmp.ne.s32.totalorder %s275_s14, %s460_s17  ;;  %p466_p5 = scmp.lt.s32.totalorder %s460_s17, %s460_s17 }
 0x33f   :  { %p467_p6 = por %p466_p5, %p465_p4 }
 0x341   :  { %p468_p7 = pnand %p467_p6, %p461_p3 }
 0x343   :  { %471 = shalt.err (!%p468_p7)
}
 0x344   :  { %277 = dma.vmem_to_hbm [thread:$0]  %s275_s14, 64, %s641_s8, [#allocation8]  }
 0x345   :  { %482 = dma.done.wait [#allocation4], 128  }
 0x346   :  { %483 = vsyncadd [#allocation4], 4294967168 }
 0x347   :  { %484 = dma.done.wait [#allocation8], 192  }
 0x348   :  { %485 = vsyncadd [#allocation8], 4294967104 }
 0x349   :  { %287 = vsyncpa [#allocation4], 1 }
 0x34a   :  { %288 = vsyncpa [#allocation8], 1 }
 0x34b   :  { %289 = vsyncpa [#allocation5], 1 }

</bundles_post_ra>
